<compile_context>
chip_gen: v7x
topology: tpu7x:2x2x1
jax: 0.10.0
libtpu: 0.0.40
codegen_flags: <defaults>
</compile_context>

<pallas_src>
import functools

import jax
import jax.numpy as jnp
import numpy as np
from jax.experimental import pallas as pl
from jax.experimental.pallas import tpu as pltpu


# ----------------------------------------------------------------------------
# Stage A kernel: channel-sum of (org - enh) + AvgPool2d(4) -> pooled diff d.
# ----------------------------------------------------------------------------
def _pool_diff_kernel(ah_ref, aw_ref, org_ref, enh_ref, d_ref, *, inv_c):
    # ah_ref: (THp, TH)  tile-local row-pool matrix (0.25 folded in), VMEM resident
    # aw_ref: (W, Wp)    col-pool matrix            (0.25 folded in), VMEM resident
    # org_ref / enh_ref: (C, TH, W) tile of one batch element (stream dtype)
    # d_ref:             (THp, Wp)  pooled-difference tile (f32)
    C = org_ref.shape[0]

    # Channel reduction of the difference, one (TH, W) slab at a time so the
    # live f32 vreg set stays small (C is small; MXU-folding per review is
    # unnecessary here).
    acc = org_ref[0].astype(jnp.float32) - enh_ref[0].astype(jnp.float32)
    for c in range(1, C):
        acc = acc + (org_ref[c].astype(jnp.float32) - enh_ref[c].astype(jnp.float32))

    # AvgPool2d(4) as two small matmuls against the resident matrices; the MXU
    # work is hidden under the HBM stream.  1/C is applied as an f32 scalar.
    t = jnp.dot(ah_ref[...], acc, preferred_element_type=jnp.float32)
    d = jnp.dot(t, aw_ref[...], preferred_element_type=jnp.float32)
    d_ref[...] = (d * inv_c).astype(d_ref.dtype)


# ----------------------------------------------------------------------------
# Generation-aware tiling.
# ----------------------------------------------------------------------------
def _vmem_capacity_bytes():
    try:
        info = pltpu.get_tpu_info()
        cap = int(getattr(info, "vmem_capacity_bytes", 0))
        if cap > 0:
            return cap
    except Exception:
        pass
    return 64 * 1024 * 1024  # conservative fallback (v7x per-core VMEM)


def _choose_tile_h(H, W, C, B, in_itemsize, budget_bytes):
    """Largest TH dividing H (preferring multiples of 32 so TH/4 is a multiple
    of 8) whose full double-buffered pipeline footprint fits budget_bytes."""
    Wp = W // 4

    def footprint(th):
        thp = th // 4
        inputs = 2 * 2 * C * th * W * in_itemsize   # org + enh, 2 pipeline buffers each
        out = 2 * thp * Wp * 4                      # pooled-diff tile, 2 buffers
        ah = 2 * thp * th * 4                       # resident row-pool matrix
        aw = 2 * W * Wp * 4                         # resident col-pool matrix
        return inputs + out + ah + aw

    cands = [th for th in range(32, H + 1, 32) if H % th == 0]
    if not cands:
        cands = [th for th in range(8, H + 1, 8) if H % th == 0]
    if not cands:
        cands = [H]
    fitting = [th for th in cands if footprint(th) <= budget_bytes]
    if not fitting:
        # TODO(synk): extreme shapes (very large W) could still overflow VMEM
        # here; the col-pool matrix would then need a cheaper representation.
        fitting = [min(cands)]
    th = max(fitting)
    if B % 2 == 1:
        # Prefer an even step count on the H axis so both v7x TensorCores stay
        # balanced when B alone cannot be split evenly.
        even = [t for t in fitting if (H // t) % 2 == 0]
        if even and 2 * max(even) >= th:
            th = max(even)
    return th


# ----------------------------------------------------------------------------
# Wrapper.
# ----------------------------------------------------------------------------
@functools.partial(jax.jit, static_argnames=("stream_dtype",))
def l_spa(org, enhance, stream_dtype=jnp.bfloat16):
    """Pallas implementation of L_spa.forward(org, enhance)."""
    B, C, H, W = org.shape
    assert H % 4 == 0 and W % 4 == 0, "H, W must be divisible by 4 (AvgPool2d(4))"
    Hp, Wp = H // 4, W // 4

    in_itemsize = np.dtype(stream_dtype).itemsize
    vmem_cap = _vmem_capacity_bytes()
    vmem_limit = min(int(vmem_cap * 0.80), 100 * 1024 * 1024)  # ~100MiB v5e/v6e, ~51MiB v7x
    tile_budget = vmem_limit - 4 * 1024 * 1024                 # Mosaic internal-scratch headroom
    TH = _choose_tile_h(H, W, C, B, in_itemsize, tile_budget)
    n_th = H // TH
    THp = TH // 4

    # TODO(synk): in a real pipeline pass bf16 activations in directly; this
    # cast is a separate XLA op and costs one extra HBM pass for f32 inputs.
    org_s = org.astype(stream_dtype)
    enh_s = enhance.astype(stream_dtype)

    # Pooling matrices: 0.25 folded into each (exact), 1/C applied as an f32
    # scalar in-kernel.  Built once, kept VMEM-resident via constant index_maps.
    rr = np.arange(THp)[:, None]
    ii = np.arange(TH)[None, :]
    ah = jnp.asarray(np.where(ii // 4 == rr, 0.25, 0.0), dtype=jnp.float32)
    jj = np.arange(W)[:, None]
    cc = np.arange(Wp)[None, :]
    aw = jnp.asarray(np.where(jj // 4 == cc, 0.25, 0.0), dtype=jnp.float32)

    cost = pl.CostEstimate(
        flops=int(B * (2 * C * H * W + 2 * Hp * TH * W + 2 * Hp * W * Wp + Hp * Wp)),
        transcendentals=0,
        bytes_accessed=int(2 * B * C * H * W * in_itemsize + 4 * B * Hp * Wp
                           + 4 * (THp * TH + W * Wp)),
    )

    d4 = pl.pallas_call(
        functools.partial(_pool_diff_kernel, inv_c=float(1.0 / C)),
        out_shape=jax.ShapeDtypeStruct((B, n_th, THp, Wp), jnp.float32),
        grid_spec=pltpu.PrefetchScalarGridSpec(
            num_scalar_prefetch=0,
            grid=(B, n_th),
            in_specs=[
                pl.BlockSpec((THp, TH), lambda b, h: (0, 0)),
                pl.BlockSpec((W, Wp), lambda b, h: (0, 0)),
                pl.BlockSpec((None, C, TH, W), lambda b, h: (b, 0, h, 0)),
                pl.BlockSpec((None, C, TH, W), lambda b, h: (b, 0, h, 0)),
            ],
            out_specs=pl.BlockSpec((None, None, THp, Wp), lambda b, h: (b, h, 0, 0)),
        ),
        compiler_params=pltpu.CompilerParams(
            dimension_semantics=("parallel", "parallel"),
            vmem_limit_bytes=vmem_limit,
        ),
        cost_estimate=cost,
    )(ah, aw, org_s, enh_s)

    d = d4.reshape(B, Hp, Wp)

    # Stage B (XLA, tiny): zero-padded directional diffs of d, squared + summed.
    zc = jnp.zeros((B, Hp, 1), d.dtype)
    zr = jnp.zeros((B, 1, Wp), d.dtype)
    left = jnp.concatenate([zc, d[:, :, :-1]], axis=2)     # d[i, j-1], 0 at j == 0
    right = jnp.concatenate([d[:, :, 1:], zc], axis=2)     # d[i, j+1], 0 at j == Wp-1
    up = jnp.concatenate([zr, d[:, :-1, :]], axis=1)       # d[i-1, j], 0 at i == 0
    down = jnp.concatenate([d[:, 1:, :], zr], axis=1)      # d[i+1, j], 0 at i == Hp-1
    e = (d - left) ** 2 + (d - right) ** 2 + (d - up) ** 2 + (d - down) ** 2
    return e[:, None, :, :]


# ----------------------------------------------------------------------------
# Plain-JAX reference mirroring the PyTorch forward (for validation).
# ----------------------------------------------------------------------------
def l_spa_ref(org, enhance):
    org_mean = jnp.mean(org, axis=1, keepdims=True)
    enh_mean = jnp.mean(enhance, axis=1, keepdims=True)

    def pool(x):
        B, _, H, W = x.shape
        return jnp.mean(x.reshape(B, 1, H // 4, 4, W // 4, 4), axis=(3, 5))

    op, ep = pool(org_mean), pool(enh_mean)

    def grads(x):
        left = jnp.pad(x, ((0, 0), (0, 0), (0, 0), (1, 0)))[:, :, :, :-1]
        right = jnp.pad(x, ((0, 0), (0, 0), (0, 0), (0, 1)))[:, :, :, 1:]
        up = jnp.pad(x, ((0, 0), (0, 0), (1, 0), (0, 0)))[:, :, :-1, :]
        down = jnp.pad(x, ((0, 0), (0, 0), (0, 1), (0, 0)))[:, :, 1:, :]
        return x - left, x - right, x - up, x - down

    ol, orr, ou, od = grads(op)
    el, er, eu, ed = grads(ep)
    return (ol - el) ** 2 + (orr - er) ** 2 + (ou - eu) ** 2 + (od - ed) ** 2


if __name__ == "__main__":
    key = jax.random.PRNGKey(0)
    k1, k2 = jax.random.split(key)
    B, C, H, W = 2, 4, 16, 16
    org = jax.random.uniform(k1, (B, C, H, W), dtype=jnp.float32)
    enhance = jax.random.uniform(k2, (B, C, H, W), dtype=jnp.float32)

    ref = l_spa_ref(org, enhance)

    # Exact-semantics path (f32 streaming): tight tolerance.
    out_f32 = jax.block_until_ready(l_spa(org, enhance, stream_dtype=jnp.float32))
    assert out_f32.shape == (B, 1, H // 4, W // 4)
    np.testing.assert_allclose(np.asarray(out_f32), np.asarray(ref), rtol=1e-5, atol=1e-5)

    # Bandwidth-optimized default path (bf16 streaming): looser tolerance for
    # the input-quantization noise on the tiny squared-gradient values.
    out_bf16 = jax.block_until_ready(l_spa(org, enhance))
    assert out_bf16.shape == (B, 1, H // 4, W // 4)
    np.testing.assert_allclose(np.asarray(out_bf16), np.asarray(ref), rtol=2e-2, atol=1e-3)

    print("KERNEL_OK")
</pallas_src>

<mosaic_0001>
module attributes {stable_mosaic.version = 11 : i64} {
  func.func @_pool_diff_kernel(%arg0: i32, %arg1: i32, %arg2: memref<4x16xf32, #tpu.memory_space<vmem>>, %arg3: memref<16x4xf32, #tpu.memory_space<vmem>>, %arg4: memref<1x4x16x16xf32, #tpu.memory_space<vmem>>, %arg5: memref<1x4x16x16xf32, #tpu.memory_space<vmem>>, %arg6: memref<1x1x4x4xf32, #tpu.memory_space<vmem>>) attributes {dimension_semantics = [#tpu.dimension_semantics<parallel>, #tpu.dimension_semantics<parallel>], iteration_bounds = array<i64: 2, 1>, scalar_prefetch = 0 : i64, scratch_operands = 0 : i64, tpu.core_type = #tpu.core_type<tc>, window_params = [{pipeline_mode = #tpu.pipeline_mode<synchronous>, transform_indices = @transform_0, window_bounds = array<i64: 4, 16>}, {pipeline_mode = #tpu.pipeline_mode<synchronous>, transform_indices = @transform_1, window_bounds = array<i64: 16, 4>}, {transform_indices = @transform_2, window_bounds = array<i64: 1, 4, 16, 16>}, {transform_indices = @transform_3, window_bounds = array<i64: 1, 4, 16, 16>}, {transform_indices = @transform_4, window_bounds = array<i64: 1, 1, 4, 4>}]} {
    %c0 = arith.constant 0 : index
    %c0_0 = arith.constant 0 : index
    %c0_1 = arith.constant 0 : index
    %c0_2 = arith.constant 0 : index
    %0 = vector.load %arg4[%c0, %c0_0, %c0_1, %c0_2] : memref<1x4x16x16xf32, #tpu.memory_space<vmem>>, vector<1x1x16x16xf32>
    %1 = vector.shape_cast %0 : vector<1x1x16x16xf32> to vector<16x16xf32>
    %c0_3 = arith.constant 0 : index
    %c0_4 = arith.constant 0 : index
    %c0_5 = arith.constant 0 : index
    %c0_6 = arith.constant 0 : index
    %2 = vector.load %arg5[%c0_3, %c0_4, %c0_5, %c0_6] : memref<1x4x16x16xf32, #tpu.memory_space<vmem>>, vector<1x1x16x16xf32>
    %3 = vector.shape_cast %2 : vector<1x1x16x16xf32> to vector<16x16xf32>
    %4 = arith.subf %1, %3 : vector<16x16xf32>
    %c0_7 = arith.constant 0 : index
    %c1 = arith.constant 1 : index
    %c0_8 = arith.constant 0 : index
    %c0_9 = arith.constant 0 : index
    %5 = vector.load %arg4[%c0_7, %c1, %c0_8, %c0_9] : memref<1x4x16x16xf32, #tpu.memory_space<vmem>>, vector<1x1x16x16xf32>
    %6 = vector.shape_cast %5 : vector<1x1x16x16xf32> to vector<16x16xf32>
    %c0_10 = arith.constant 0 : index
    %c1_11 = arith.constant 1 : index
    %c0_12 = arith.constant 0 : index
    %c0_13 = arith.constant 0 : index
    %7 = vector.load %arg5[%c0_10, %c1_11, %c0_12, %c0_13] : memref<1x4x16x16xf32, #tpu.memory_space<vmem>>, vector<1x1x16x16xf32>
    %8 = vector.shape_cast %7 : vector<1x1x16x16xf32> to vector<16x16xf32>
    %9 = arith.subf %6, %8 : vector<16x16xf32>
    %10 = arith.addf %4, %9 : vector<16x16xf32>
    %c0_14 = arith.constant 0 : index
    %c2 = arith.constant 2 : index
    %c0_15 = arith.constant 0 : index
    %c0_16 = arith.constant 0 : index
    %11 = vector.load %arg4[%c0_14, %c2, %c0_15, %c0_16] : memref<1x4x16x16xf32, #tpu.memory_space<vmem>>, vector<1x1x16x16xf32>
    %12 = vector.shape_cast %11 : vector<1x1x16x16xf32> to vector<16x16xf32>
    %c0_17 = arith.constant 0 : index
    %c2_18 = arith.constant 2 : index
    %c0_19 = arith.constant 0 : index
    %c0_20 = arith.constant 0 : index
    %13 = vector.load %arg5[%c0_17, %c2_18, %c0_19, %c0_20] : memref<1x4x16x16xf32, #tpu.memory_space<vmem>>, vector<1x1x16x16xf32>
    %14 = vector.shape_cast %13 : vector<1x1x16x16xf32> to vector<16x16xf32>
    %15 = arith.subf %12, %14 : vector<16x16xf32>
    %16 = arith.addf %10, %15 : vector<16x16xf32>
    %c0_21 = arith.constant 0 : index
    %c3 = arith.constant 3 : index
    %c0_22 = arith.constant 0 : index
    %c0_23 = arith.constant 0 : index
    %17 = vector.load %arg4[%c0_21, %c3, %c0_22, %c0_23] : memref<1x4x16x16xf32, #tpu.memory_space<vmem>>, vector<1x1x16x16xf32>
    %18 = vector.shape_cast %17 : vector<1x1x16x16xf32> to vector<16x16xf32>
    %c0_24 = arith.constant 0 : index
    %c3_25 = arith.constant 3 : index
    %c0_26 = arith.constant 0 : index
    %c0_27 = arith.constant 0 : index
    %19 = vector.load %arg5[%c0_24, %c3_25, %c0_26, %c0_27] : memref<1x4x16x16xf32, #tpu.memory_space<vmem>>, vector<1x1x16x16xf32>
    %20 = vector.shape_cast %19 : vector<1x1x16x16xf32> to vector<16x16xf32>
    %21 = arith.subf %18, %20 : vector<16x16xf32>
    %22 = arith.addf %16, %21 : vector<16x16xf32>
    %c0_28 = arith.constant 0 : index
    %c0_29 = arith.constant 0 : index
    %23 = vector.load %arg2[%c0_28, %c0_29] : memref<4x16xf32, #tpu.memory_space<vmem>>, vector<4x16xf32>
    %cst = arith.constant dense<0.000000e+00> : vector<4x16xf32>
    %24 = tpu.matmul %23, %22, %cst {dimension_numbers = #tpu.dot_dimension_numbers<[1], [0], [0], [1], [0, 0, 1, 1], [], []>} : vector<4x16xf32>, vector<16x16xf32>, vector<4x16xf32> -> vector<4x16xf32>
    %c0_30 = arith.constant 0 : index
    %c0_31 = arith.constant 0 : index
    %25 = vector.load %arg3[%c0_30, %c0_31] : memref<16x4xf32, #tpu.memory_space<vmem>>, vector<16x4xf32>
    %cst_32 = arith.constant dense<0.000000e+00> : vector<4x4xf32>
    %26 = tpu.matmul %24, %25, %cst_32 {dimension_numbers = #tpu.dot_dimension_numbers<[1], [0], [0], [1], [0, 0, 1, 1], [], []>} : vector<4x16xf32>, vector<16x4xf32>, vector<4x4xf32> -> vector<4x4xf32>
    %cst_33 = arith.constant 2.500000e-01 : f32
    %27 = vector.broadcast %cst_33 : f32 to vector<4x4xf32>
    %28 = arith.mulf %26, %27 : vector<4x4xf32>
    %c0_34 = arith.constant 0 : index
    %c0_35 = arith.constant 0 : index
    %c0_36 = arith.constant 0 : index
    %c0_37 = arith.constant 0 : index
    %29 = vector.load %arg6[%c0_34, %c0_35, %c0_36, %c0_37] : memref<1x1x4x4xf32, #tpu.memory_space<vmem>>, vector<1x1x4x4xf32>
    %30 = vector.shape_cast %29 : vector<1x1x4x4xf32> to vector<4x4xf32>
    %31 = vector.shape_cast %28 : vector<4x4xf32> to vector<1x1x4x4xf32>
    tpu.vector_store %arg6[%c0_34, %c0_35, %c0_36, %c0_37], %31 {strides = array<i32>} : memref<1x1x4x4xf32, #tpu.memory_space<vmem>>, vector<1x1x4x4xf32>,
    return
  }
  func.func @transform_0(%arg0: i32, %arg1: i32) -> (i32, i32) {
    %c0_i32 = arith.constant 0 : i32
    %c0_i32_0 = arith.constant 0 : i32
    %c0_i32_1 = arith.constant 0 : i32
    return %c0_i32, %c0_i32_0 : i32, i32
  }
  func.func @transform_1(%arg0: i32, %arg1: i32) -> (i32, i32) {
    %c0_i32 = arith.constant 0 : i32
    %c0_i32_0 = arith.constant 0 : i32
    %c0_i32_1 = arith.constant 0 : i32
    return %c0_i32, %c0_i32_0 : i32, i32
  }
  func.func @transform_2(%arg0: i32, %arg1: i32) -> (i32, i32, i32, i32) {
    %c0_i32 = arith.constant 0 : i32
    %c0_i32_0 = arith.constant 0 : i32
    %c0_i32_1 = arith.constant 0 : i32
    return %arg0, %c0_i32, %arg1, %c0_i32_0 : i32, i32, i32, i32
  }
  func.func @transform_3(%arg0: i32, %arg1: i32) -> (i32, i32, i32, i32) {
    %c0_i32 = arith.constant 0 : i32
    %c0_i32_0 = arith.constant 0 : i32
    %c0_i32_1 = arith.constant 0 : i32
    return %arg0, %c0_i32, %arg1, %c0_i32_0 : i32, i32, i32, i32
  }
  func.func @transform_4(%arg0: i32, %arg1: i32) -> (i32, i32, i32, i32) {
    %c0_i32 = arith.constant 0 : i32
    %c0_i32_0 = arith.constant 0 : i32
    %c0_i32_1 = arith.constant 0 : i32
    return %arg0, %arg1, %c0_i32, %c0_i32_0 : i32, i32, i32, i32
  }
}

</mosaic_0001>

<bundles_post_ra>
// kernel: l_spa.1
= control target key start
LH: loop header
LB: loop body
LE: loop exit
PB: predicated region body
PF: predicated region fallthrough
CT: control target
= control target key end

     0   :  { %9 = vsyncpa [#allocation3], 0  ;;  %s1145_s0 = inlined_call_operand.vmem [shape: f32[4,16], index: 0, kind: input, shape index: {}]   ;;  %s1146_s1 = inlined_call_operand.hbm [shape: f32[16,4], index: 1, kind: input, shape index: {}]   ;;  %s1147_s2 = inlined_call_operand.hbm [shape: f32[2,4,16,16], index: 2, kind: input, shape index: {}]   ;;  %s1148_s3 = inlined_call_operand.hbm [shape: f32[2,4,16,16], index: 3, kind: input, shape index: {}]   ;;  %s1149_s4 = inlined_call_operand.vmem [shape: f32[2,1,4,4], index: 4, kind: output, shape index: {}]  }
   0x1   :  { %10 = vsyncpa [#allocation5], 0 }
   0x2   :  { %12 = vsyncpa [#allocation5 + $0x1], 0  ;;  %s921_s15 = smov 0   ;;  %s923_s16 = smov 0  }
   0x3   :  { %s925_s17 = smov 0   ;;  %s927_s18 = smov 0  }
   0x4   :  { %s929_s19 = smov 0   ;;  %s931_s20 = smov 0  }
   0x5 LB: > { %s30_s21 = sadd.s32 1, %s882_s19  ;;  %s81_s22 = sadd.s32 1, %s874_s17  ;;  %s886_s20 = sphi %s931_s20, %s18_s20   ;;  %s882_s19 = sphi %s929_s19, %s1170_s19   ;;  %s878_s18 = sphi %s927_s18, %s1169_s18   ;;  %s874_s17 = sphi %s925_s17, %s1168_s17   ;;  %s870_s16 = sphi %s923_s16, %s1167_s16   ;;  %s866_s15 = sphi %s921_s15, %s1166_s15  }
   0x6   : > { %p32_p0 = scmp.ge.s32.totalorder %s30_s21, 2  ;;  %p88_p1 = scmp.ne.s32.totalorder %s874_s17, %s870_s16 }
   0x7   : > { %p89_p2 = scmp.eq.s32.totalorder %s886_s20, 0  ;;  %p688_p5 = scmp.lt.s32.totalorder %s886_s20, 2 }
   0x8   : > { %s1172_s21 = smov (%p32_p0, %s30_s21), 0  ;;  %s190_s25 = sand.u32 1, %s886_s20  }
   0x9   : > { %p958_p3 = por %p89_p2, %p88_p1  ;;  %s76_s24 = ssub.s32 %s882_s19, %s1172_s21 }
   0xa   : > { %p79_p4 = scmp.eq.s32.totalorder %s76_s24, 0  ;;  %s192_s26 = sand.u32 1, %s874_s17  }
   0xb   : > { %s613_s28 = sshll.u32 %s192_s26, 6  ;;  %s640_s29 = sshll.u32 %s882_s19, 10 }
   0xc   : > { %s968_s27 = scalar_select %p79_p4, %s874_s17, %s81_s22  }
   0xd   : > { %s974_s6 = scalar_lea.hbm %s1147_s2, %s640_s29  ;;  %s194_s7 = scalar_lea.vmem [#allocation4], %s613_s28 }
   0xe   : > { %s203_s8 = sshll.u32 %s194_s7, 4  ;;  %p980_p6 = pnand %p688_p5, %p958_p3  ;;  %s976_s8 = int_to_ptr.vmem [resolvable:$true] %s203_s8 }
   0xf   : > { %s987_s12 = scalar_lea.hbm %s1148_s3, %s640_s29  ;;  %s217_s13 = scalar_lea.vmem [#allocation6], %s613_s28 }
  0x10   : > { %s989_s14 = sshll.u32 %s217_s13, 4  ;;  %s991_s22 = scalar_lea.sflag [#allocation5], %s190_s25  ;;  %s1023_s14 = int_to_ptr.vmem [resolvable:$true] %s989_s14 }
  0x11   : > { %s744_s24 = scalar_lea.hbm %s974_s6, 1024  ;;  %p746_p8 = pneg %p980_p6 }
  0x12   : > { %p745_p7 = scmp.ne.s32.totalorder %s974_s6, %s744_s24  ;;  %s749_s30 = scalar_lea.hbm %s1147_s2, 2048 }
  0x13   : > { %p750_p11 = scmp.lt.u32.totalorder %s974_s6, %s1147_s2  ;;  %p751_p12 = scmp.lt.u32.totalorder %s749_s30, %s744_s24 }
  0x14   : > { %p747_p9 = pnand %p746_p8, %p745_p7  ;;  %p753_p0 = scmp.lt.u32.totalorder %s744_s24, %s974_s6 }
  0x15   : > { %p752_p13 = por %p751_p12, %p750_p11 }
  0x16   : > { %p748_p10 = pneg %p747_p9 }
  0x17   : > { %p754_p1 = por %p753_p0, %p752_p13 }
  0x19   : > { %p755_p2 = pnand %p754_p1, %p748_p10 }
  0x1b   : > { %758 = shalt.err (!%p755_p2)
}
  0x1c   : > { %s759_s25 = scalar_lea.vmem %s976_s8, 1024  ;;  %s888_s28 = smov [#allocation4]  }
  0x1d   : > { %p760_p3 = scmp.ne.s32.totalorder %s976_s8, %s759_s25  ;;  %s764_s7 = sshll.u32 %s888_s28, 4  ;;  %s765_s7 = int_to_ptr.vmem [resolvable:$false] %s764_s7 }
  0x1e   : > { %s766_s10 = scalar_lea.vmem %s765_s7, 2048  ;;  %p767_p7 = scmp.lt.s32.totalorder %s976_s8, %s765_s7 }
  0x1f   : > { %p762_p4 = pnand %p760_p3, %p746_p8  ;;  %p768_p9 = scmp.lt.s32.totalorder %s766_s10, %s759_s25 }
  0x21   : > { %p763_p5 = pneg %p762_p4  ;;  %p769_p11 = por %p768_p9, %p767_p7 }
  0x23   : > { %p770_p12 = pnand %p769_p11, %p763_p5 }
  0x25   : > { %773 = shalt.err (!%p770_p12)
}
  0x26   : > { %s889_s11 = smov 128   ;;  %s890_s13 = smov 8  }
  0x27   : > { %683 = dma.hbm_to_vmem [thread:$0]  (!%p980_p6), %s974_s6, 1024, %s976_s8, %s991_s22, %s889_s11, %s889_s11, %s890_s13  }
  0x28   : > { %s608_s24 = sadd.s32 4294967295, %s886_s20   ;;  %p94_p10 = scmp.ne.s32.totalorder %s870_s16, %s866_s15 }
  0x29   : > { %p1030_p13 = scmp.eq.s32.totalorder %s608_s24, 0  ;;  %p610_p0 = scmp.ge.s32.totalorder %s886_s20, 1 }
  0x2a   : > { %p161_p1 = scmp.lt.s32.totalorder %s886_s20, 3  ;;  %s891_s15 = smov [#allocation2]  }
  0x2b   : > { %s1157_s23 = scalar_select %p1030_p13, 1, 0 }
  0x2c   : > { %p1038_p2 = por %p1030_p13, %p94_p10  ;;  %p1042_p3 = pnand %p610_p0, %p161_p1 }
  0x2d   : > { %s1046_s8 = sshll.u32 %s891_s15, 4  ;;  %s774_s30 = scalar_lea.hbm %s987_s12, 1024  ;;  %s177_s8 = int_to_ptr.vmem [resolvable:$true] %s1046_s8 }
  0x2e   : > { %s1158_s26 = scalar_select %p1038_p2, 1, 0 }
  0x2f   : > { %s1159_s6 = scalar_select %p1042_p3, 1, 0 }
  0x30   : > { %p775_p5 = scmp.ne.s32.totalorder %s987_s12, %s774_s30  ;;  %s779_s25 = scalar_lea.hbm %s1148_s3, 2048 }
  0x31   : > { %p780_p11 = scmp.lt.u32.totalorder %s987_s12, %s1148_s3  ;;  %p781_p12 = scmp.lt.u32.totalorder %s779_s25, %s774_s30 }
  0x32   : > { %p777_p7 = pnand %p775_p5, %p746_p8  ;;  %p783_p0 = scmp.lt.u32.totalorder %s774_s30, %s987_s12 }
  0x33   : > { %p782_p10 = por %p781_p12, %p780_p11 }
  0x34   : > { %p778_p9 = pneg %p777_p7 }
  0x35   : > { %p784_p1 = por %p783_p0, %p782_p10 }
  0x37   : > { %p785_p2 = pnand %p784_p1, %p778_p9 }
  0x39   : > { %788 = shalt.err (!%p785_p2)
}
  0x3a   : > { %s789_s10 = scalar_lea.vmem %s1023_s14, 1024  ;;  %s892_s15 = smov [#allocation6]  }
  0x3b   : > { %p790_p5 = scmp.ne.s32.totalorder %s1023_s14, %s789_s10  ;;  %s794_s5 = sshll.u32 %s892_s15, 4  ;;  %s795_s5 = int_to_ptr.vmem [resolvable:$false] %s794_s5 }
  0x3c   : > { %s796_s29 = scalar_lea.vmem %s795_s5, 2048  ;;  %p797_p3 = scmp.lt.s32.totalorder %s1023_s14, %s795_s5 }
  0x3d   : > { %p792_p7 = pnand %p790_p5, %p746_p8  ;;  %p798_p11 = scmp.lt.s32.totalorder %s796_s29, %s789_s10 }
  0x3f   : > { %p793_p4 = pneg %p792_p7  ;;  %p799_p12 = por %p798_p11, %p797_p3 }
  0x41   : > { %p800_p10 = pnand %p799_p12, %p793_p4 }
  0x43   : > { %803 = shalt.err (!%p800_p10)
}
  0x44   : > { %686 = dma.hbm_to_vmem [thread:$0]  (!%p980_p6), %s987_s12, 1024, %s1023_s14, %s991_s22, %s889_s11, %s889_s11, %s890_s13  }
  0x45   : > { %p1160_p8 = scmp.ne.s32.totalorder %s1159_s6, 0  ;;  %s804_s28 = scalar_lea.hbm %s1146_s1, 256 }
  0x46   : > { %p805_p3 = scmp.ne.s32.totalorder %s1146_s1, %s804_s28  ;;  %p811_p1 = scmp.lt.u32.totalorder %s804_s28, %s1146_s1 }
  0x47   : > { %p1161_p2 = pneg %p1160_p8 }
  0x49   : > { %p1083_p9 = pnand %p1161_p2, %p1030_p13 }
  0x4b   : > { %p806_p4 = pneg %p1083_p9 }
  0x4d   : > { %p807_p6 = pnand %p806_p4, %p805_p3 }
  0x4f   : > { %p808_p0 = pneg %p807_p6 }
  0x51   : > { %p813_p5 = pnand %p811_p1, %p808_p0 }
  0x53   : > { %816 = shalt.err (!%p813_p5)
}
  0x54   : > { %s817_s22 = scalar_lea.vmem %s177_s8, 256  ;;  %p825_p10 = scmp.lt.s32.totalorder %s177_s8, %s177_s8 }
  0x55   : > { %p818_p7 = scmp.ne.s32.totalorder %s177_s8, %s817_s22  ;;  %p826_p2 = scmp.lt.s32.totalorder %s817_s22, %s817_s22 }
  0x57   : > { %p820_p11 = pnand %p818_p7, %p806_p4  ;;  %p827_p13 = por %p826_p2, %p825_p10 }
  0x59   : > { %p821_p12 = pneg %p820_p11 }
  0x5b   : > { %p828_p8 = pnand %p827_p13, %p821_p12 }
  0x5d   : > { %831 = shalt.err (!%p828_p8)
}
  0x5e   : > { %679 = dma.hbm_to_vmem [thread:$0]  (!%p1083_p9), %s1146_s1, 256, %s177_s8, [#allocation3], %s889_s11, %s889_s11, %s890_s13  }
  0x5f   : > { %p1163_p3 = scmp.ne.s32.totalorder %s1159_s6, 0 }
  0x60   : > { %p1164_p4 = scmp.ne.s32.totalorder (!%p1163_p3), %s1157_s23, 0 }
  0x61   : > { %238 = sbr.rel (%p1163_p3) target bundleno = 554 (0x22a), region = 36 }
  0x68   : > { %857 = dma.done.wait (%p1164_p4), [#allocation3], 256  }
  0x69   : > { %859 = vsyncadd (%p1164_p4), [#allocation3], 4294967040  ;;  %s244_s29 = sand.u32 1, %s608_s24   ;;  %s246_s30 = sand.u32 1, %s870_s16  }
  0x6a   : > { %s621_s25 = sshll.u32 %s246_s30, 6  ;;  %s245_s9 = scalar_lea.sflag [#allocation5], %s244_s29 }
  0x6b   : > { %s248_s28 = scalar_lea.vmem [#allocation4], %s621_s25  ;;  %p1165_p13 = scmp.ne.s32.totalorder %s1158_s26, 0 }
  0x6d   : > { %861 = dma.done.wait (%p1165_p13), %s245_s9, 2048  }
  0x6e   : > { %863 = vsyncadd (%p1165_p13), %s245_s9, 4294965248  ;;  %v893_v0 = vmov 0.0|0.0   ;;  %vm894_vm0 = vmmov 0   ;;  %v895_v1 = vmov 0.0   ;;  %v298_v2 = vld [vmem:[%s248_s28] sm:$0xff]  ;;  %v299_v3 = vld [vmem:[%s248_s28 + $0x8] sm:$0xff] }
  0x6f   : > { %662 = vmatprep.subr.bf16.mxu0 %v893_v0  ;;  %652 = vmatprep.mubr.msk.f32.mxu0 %vm894_vm0, %v895_v1  ;;  %s257_s11 = scalar_lea.vmem [#allocation6], %s621_s25  ;;  %v624_v7 = vld [vmem:[%s248_s28 + $0x10] sm:$0xff]  ;;  %v625_v8 = vld [vmem:[%s248_s28 + $0x18] sm:$0xff]  ;;  %v628_v12 = vld [vmem:[%s248_s28 + $0x20] sm:$0xff]  ;;  %vm335_vm1 = vcmask 130048   ;;  %p291_p8 = scmp.lt.s32.totalorder %s878_s18, 1 }
  0x70   : > { %665 = vmatprep.subr.bf16.mxu1 %v893_v0  ;;  %659 = vmatprep.mubr.msk.f32.mxu1 %vm894_vm0, %v895_v1  ;;  %v300_v4 = vld [vmem:[%s257_s11] sm:$0xff]  ;;  %v301_v5 = vld [vmem:[%s257_s11 + $0x8] sm:$0xff]  ;;  %v626_v10 = vld [vmem:[%s257_s11 + $0x10] sm:$0xff]  ;;  %vm485_vm2 = vcmask 27648  }
  0x71   : > { %v302_v6 = vsub.f32 %v298_v2, %v300_v4  ;;  %v303_v9 = vsub.f32 %v299_v3, %v301_v5  ;;  %v627_v11 = vld [vmem:[%s257_s11 + $0x18] sm:$0xff]  ;;  %v310_v13 = vsub.f32 %v624_v7, %v626_v10  ;;  %v629_v15 = vld [vmem:[%s248_s28 + $0x28] sm:$0xff]  ;;  %v630_v16 = vld [vmem:[%s257_s11 + $0x20] sm:$0xff]  ;;  %s1174_s18 = smov (!%p291_p8, %s878_s18), 1 }
  0x72   : > { %v311_v14 = vsub.f32 %v625_v8, %v627_v11  ;;  %v631_v17 = vld [vmem:[%s257_s11 + $0x28] sm:$0xff]  ;;  %v320_v18 = vsub.f32 %v628_v12, %v630_v16  ;;  %v632_v20 = vld [vmem:[%s248_s28 + $0x30] sm:$0xff]  ;;  %v633_v21 = vld [vmem:[%s248_s28 + $0x38] sm:$0xff]  ;;  %s623_s23 = sshll.u32 %s1174_s18, 2 }
  0x73   : > { %v321_v19 = vsub.f32 %v629_v15, %v631_v17  ;;  %v634_v22 = vld [vmem:[%s257_s11 + $0x30] sm:$0xff]  ;;  %v312_v23 = vadd.f32 %v310_v13, %v302_v6  ;;  %v635_v25 = vld [vmem:[%s257_s11 + $0x38] sm:$0xff]  ;;  %v334_v36 = vld [vmem:[%s1145_s0] sm:$0xf]  ;;  %s297_s8 = scalar_lea.vmem %s1149_s4, %s623_s23 }
  0x74   : > { %v313_v24 = vadd.f32 %v311_v14, %v303_v9  ;;  %v330_v26 = vsub.f32 %v632_v20, %v634_v22  ;;  %v409_v27 = vld [vmem:[#allocation2] sm:$0xff]  ;;  %v331_v28 = vsub.f32 %v633_v21, %v635_v25  ;;  %v410_v29 = vld [vmem:[#allocation2 + $0x8] sm:$0xff] }
  0x75   : > { %v322_v30 = vadd.f32 %v320_v18, %v312_v23  ;;  %v666_v32 = vpack.c.bf16 %v410_v29, %v409_v27 }
  0x76   : > { %v323_v31 = vadd.f32 %v321_v19, %v313_v24 }
  0x77   : > { %v332_v33 = vadd.f32 %v330_v26, %v322_v30  ;;  %667 = vmatpush3.bf16.msra.mxu1 %v666_v32 }
  0x78   : > { %v333_v34 = vadd.f32 %v331_v28, %v323_v31 }
  0x7a   : > { %v663_v35 = vpack.c.bf16 %v333_v34, %v332_v33 }
  0x7c   : > { %664 = vmatpush3.bf16.msra.mxu0 %v663_v35 }
  0x7f   : > { %653 = vmatmul.mubr.msk.f32.vlgmr.msra.gmra.mrb[0].mxu0 %vm335_vm1, %v334_v36 }
 0x152   : > { %v405_v37 = vpop.f32.mrb[0].mxu0 }
 0x153   : > { %v654_v38 = vpop.f32.mrb[1].mxu0  ;;  %660 = vmatmul.mubr.msk.f32.vlgmr.msra.gmra.mrb[0].mxu1 %vm335_vm1, %v405_v37 }
 0x226   : > { %v480_v39 = vpop.f32.mrb[0].mxu1 }
 0x227   : > { %v484_v40 = vmul.f32 0.25, %v480_v39  ;;  %v661_v41 = vpop.f32.mrb[1].mxu1 }
 0x229   : > { %486 = vst.msk [vmem:[%s297_s8] sm:$0xf] %vm485_vm2, %v484_v40 }
 0x22a PF: > { %s18_s20 = sadd.s32 1, %s886_s20   ;;  %s1166_s15 = smov %s870_s16 }
 0x22b   : > { %p15_p9 = scmp.ge.s32.totalorder %s18_s20, 4   ;;  %s1167_s16 = smov %s874_s17 }
 0x22c   : > { %s1168_s17 = smov %s968_s27  ;;  %s1169_s18 = smov %s882_s19 }
 0x22d   : > { %s1170_s19 = smov %s1172_s21  ;;  %17 = sbr.rel (!%p15_p9) target bundleno = 5 (0x5), region = 98 }
 0x234   :  { %512 = vsyncpa [#allocation3], 1 }
 0x235   :  { %514 = vsyncpa [#allocation3 + $0x1], 1 }
 0x236   :  { %515 = vsyncpa [#allocation5], 1 }
 0x237   :  { %517 = vsyncpa [#allocation5 + $0x1], 1 }

</bundles_post_ra>
